<compile_context>
chip_gen: v7x
topology: tpu7x:2x2x1
jax: 0.10.0
libtpu: 0.0.40
codegen_flags: <defaults>
</compile_context>

<pallas_src>
import math
import functools

import jax
import jax.numpy as jnp
from jax import lax
from jax.experimental import pallas as pl
from jax.experimental.pallas import tpu as pltpu


NEG_INF = -1000000000.0          # matches the PyTorch module's masked_fill value
COMPUTE_DTYPE = jnp.bfloat16     # MXU input dtype (accumulation is always f32)


def _divisor_tile(n, target, align=8):
    """Largest multiple of `align` <= target that divides n; n itself if none / n small."""
    if n <= target:
        return n
    for t in range(target, align - 1, -1):
        if n % t == 0 and t % align == 0:
            return t
    return n


def _vmem_limit(bytes_needed):
    """Scoped-VMEM limit: at least the common 32 MiB default, headroom above the
    estimated double-buffered working set, capped at 128 MiB (it is a limit, not
    an allocation)."""
    return int(min(max(32 << 20, bytes_needed + (4 << 20)), 128 << 20))


# ----------------------------------------------------------------------------
# Linear kernels (bf16 MXU, f32 accumulation)
# ----------------------------------------------------------------------------

def _linear_kernel(x_ref, w_ref, b_ref, o_ref, *, compute_dtype):
    x = x_ref[...].astype(compute_dtype)        # in-VMEM cast; avoids an XLA cast pass
    acc = jnp.dot(x, w_ref[...], preferred_element_type=jnp.float32)
    o_ref[...] = (acc + b_ref[...]).astype(o_ref.dtype)


def linear_pallas(x, w, b, *, out_dtype=None, block_rows=512):
    """y = x @ w + b, tiled over rows.  w is (d_in, d_out), pre-cast to bf16;
    b stays f32 and is added to the f32 accumulator."""
    n, d_in = x.shape
    d_out = w.shape[1]
    out_dtype = x.dtype if out_dtype is None else out_dtype
    tm = _divisor_tile(n, block_rows, align=16)      # 16: bf16 sublane packing
    est = 2 * (tm * d_in * x.dtype.itemsize
               + tm * d_out * jnp.dtype(out_dtype).itemsize
               + d_in * d_out * w.dtype.itemsize + d_out * 4)
    return pl.pallas_call(
        functools.partial(_linear_kernel, compute_dtype=w.dtype),
        out_shape=jax.ShapeDtypeStruct((n, d_out), out_dtype),
        grid_spec=pltpu.PrefetchScalarGridSpec(
            num_scalar_prefetch=0,
            grid=(pl.cdiv(n, tm),),
            in_specs=[
                pl.BlockSpec((tm, d_in), lambda i: (i, 0)),
                pl.BlockSpec((d_in, d_out), lambda i: (0, 0)),
                pl.BlockSpec((1, d_out), lambda i: (0, 0)),
            ],
            out_specs=pl.BlockSpec((tm, d_out), lambda i: (i, 0)),
        ),
        compiler_params=pltpu.CompilerParams(
            dimension_semantics=("parallel",),
            vmem_limit_bytes=_vmem_limit(est)),
    )(x, w, b.reshape(1, d_out))


def _qkv_proj_kernel(x_ref, w_ref, b_ref, q_ref, k_ref, v_ref, *, d_model, compute_dtype):
    # Single wide matmul (d_model x 3*d_model), then split into three dense outputs.
    x = x_ref[...].astype(compute_dtype)
    y = jnp.dot(x, w_ref[...], preferred_element_type=jnp.float32) + b_ref[...]
    y = y.astype(q_ref.dtype)
    q_ref[...] = y[:, 0 * d_model:1 * d_model]
    k_ref[...] = y[:, 1 * d_model:2 * d_model]
    v_ref[...] = y[:, 2 * d_model:3 * d_model]


def qkv_proj_pallas(x, w_qkv, b_qkv, *, out_dtype=None, block_rows=512):
    """Fused Q/K/V projection: x (N, D) @ w_qkv (D, 3D) + b_qkv -> (q, k, v) in bf16."""
    n, d_model = x.shape
    assert w_qkv.shape == (d_model, 3 * d_model)
    out_dtype = w_qkv.dtype if out_dtype is None else out_dtype
    tm = _divisor_tile(n, block_rows, align=16)
    out = jax.ShapeDtypeStruct((n, d_model), out_dtype)
    est = 2 * (tm * d_model * x.dtype.itemsize
               + 3 * tm * d_model * jnp.dtype(out_dtype).itemsize
               + 3 * d_model * d_model * w_qkv.dtype.itemsize + 3 * d_model * 4)
    kern = functools.partial(_qkv_proj_kernel, d_model=d_model, compute_dtype=w_qkv.dtype)
    return pl.pallas_call(
        kern,
        out_shape=(out, out, out),
        grid_spec=pltpu.PrefetchScalarGridSpec(
            num_scalar_prefetch=0,
            grid=(pl.cdiv(n, tm),),
            in_specs=[
                pl.BlockSpec((tm, d_model), lambda i: (i, 0)),
                pl.BlockSpec((d_model, 3 * d_model), lambda i: (0, 0)),
                pl.BlockSpec((1, 3 * d_model), lambda i: (0, 0)),
            ],
            out_specs=(
                pl.BlockSpec((tm, d_model), lambda i: (i, 0)),
                pl.BlockSpec((tm, d_model), lambda i: (i, 0)),
                pl.BlockSpec((tm, d_model), lambda i: (i, 0)),
            ),
        ),
        compiler_params=pltpu.CompilerParams(
            dimension_semantics=("parallel",),
            vmem_limit_bytes=_vmem_limit(est)),
    )(x, w_qkv, b_qkv.reshape(1, 3 * d_model))


# ----------------------------------------------------------------------------
# Flash-style multi-head attention (online softmax over KV tiles)
# ----------------------------------------------------------------------------

def _flash_mha_kernel(*refs, h, d_k, scale, has_mask, causal, tq, tkv):
    if has_mask:
        mask_ref, q_ref, k_ref, v_ref, o_ref, m_sc, l_sc, acc_sc = refs
    else:
        q_ref, k_ref, v_ref, o_ref, m_sc, l_sc, acc_sc = refs

    qi = pl.program_id(1)
    ki = pl.program_id(2)

    @pl.when(ki == 0)
    def _init():
        m_sc[...] = jnp.full(m_sc.shape, -jnp.inf, dtype=jnp.float32)
        l_sc[...] = jnp.zeros(l_sc.shape, dtype=jnp.float32)
        acc_sc[...] = jnp.zeros(acc_sc.shape, dtype=jnp.float32)

    def _compute():
        if has_mask:
            masked_out = mask_ref[0] == 0                       # (tq, tkv), hoisted over heads
        elif causal:
            row = lax.broadcasted_iota(jnp.int32, (tq, tkv), 0) + qi * tq
            col = lax.broadcasted_iota(jnp.int32, (tq, tkv), 1) + ki * tkv
            masked_out = col > row
        else:
            masked_out = None

        # Static loop over heads: all heads of this (batch, q-tile) reuse the same
        # resident Q/K/V VMEM tiles; head split is static lane slicing.
        # NOTE: fully unrolled, so one (tq, tkv) f32 s/p pair may stay live per head;
        # if this ever becomes spill-bound (check ld/st slot_util), reduce tkv.
        for hh in range(h):
            lo = hh * d_k
            q = q_ref[0, :, lo:lo + d_k]                         # bf16
            k = k_ref[0, :, lo:lo + d_k]
            v = v_ref[0, :, lo:lo + d_k]

            # QK^T on the MXU (bf16 in, f32 accumulate), no explicit transpose;
            # 1/sqrt(d_k) applied to the f32 scores (no bf16 re-rounding of Q).
            s = lax.dot_general(q, k, (((1,), (1,)), ((), ())),
                                preferred_element_type=jnp.float32) * scale
            if masked_out is not None:
                s = jnp.where(masked_out, NEG_INF, s)

            m_prev = m_sc[hh]                                    # (tq, 1)
            m_new = jnp.maximum(m_prev, jnp.max(s, axis=-1, keepdims=True))
            alpha = jnp.exp(m_prev - m_new)
            p = jnp.exp(s - m_new)
            l_sc[hh] = alpha * l_sc[hh] + jnp.sum(p, axis=-1, keepdims=True)
            acc_sc[hh] = alpha * acc_sc[hh] + jnp.dot(
                p.astype(v.dtype), v, preferred_element_type=jnp.float32)
            m_sc[hh] = m_new

    if causal:
        # Skip KV tiles lying entirely above the diagonal (~half of them for causal).
        @pl.when(ki * tkv <= qi * tq + (tq - 1))
        def _():
            _compute()
    else:
        _compute()

    @pl.when(ki == pl.num_programs(2) - 1)
    def _finalize():
        inv_l = pl.reciprocal(l_sc[...], approx=True)            # EUP, off the VALU path
        # One dense (tq, d_model) store (heads concatenated in-register) instead of
        # h sub-128-lane masked stores.
        o_ref[0, :, :] = jnp.concatenate(
            [acc_sc[hh] * inv_l[hh] for hh in range(h)], axis=-1).astype(o_ref.dtype)


def flash_mha_pallas(q, k, v, mask, h, *, causal=False, q_block=256, kv_block=256):
    """q: (B, Sq, D); k, v: (B, Skv, D) with heads packed along the last axis.
    mask: (B, Sq, Skv), any numeric dtype (nonzero = keep), or None.
    causal=True generates the causal mask in-kernel (any `mask` is ignored) and
    skips fully-masked KV tiles.  Returns the context in (B, Sq, D) layout."""
    B, Sq, D = q.shape
    Skv = k.shape[1]
    assert D % h == 0
    d_k = D // h
    has_mask = (mask is not None) and (not causal)

    # Tile sizes: sweep {256, 512}; tq is the bigger lever (K/V HBM re-reads scale
    # with Sq/tq).  tkv kept 128-aligned so the (.., tq, tkv) mask block stays legal.
    tq = _divisor_tile(Sq, q_block, align=16)
    tkv = _divisor_tile(Skv, kv_block, align=128)
    grid = (B, Sq // tq, Skv // tkv)       # B and q-tiles "parallel" (megacore), kv last
    scale = 1.0 / math.sqrt(d_k)

    kern = functools.partial(_flash_mha_kernel, h=h, d_k=d_k, scale=scale,
                             has_mask=has_mask, causal=causal, tq=tq, tkv=tkv)

    q_spec = pl.BlockSpec((1, tq, D), lambda b, qi, ki: (b, qi, 0))
    kv_spec = pl.BlockSpec((1, tkv, D), lambda b, qi, ki: (b, ki, 0))

    inputs, in_specs = [], []
    if has_mask:
        inputs.append(mask)     # read in native dtype; no per-call conversion pass
        in_specs.append(pl.BlockSpec((1, tq, tkv), lambda b, qi, ki: (b, qi, ki)))
    inputs += [q, k, v]
    in_specs += [q_spec, kv_spec, kv_spec]

    qkv_bytes = (tq + 2 * tkv) * D * q.dtype.itemsize
    out_bytes = tq * D * q.dtype.itemsize
    mask_bytes = tq * tkv * mask.dtype.itemsize if has_mask else 0
    scratch_bytes = h * tq * (d_k + 2) * 4
    est = 2 * (qkv_bytes + out_bytes + mask_bytes) + scratch_bytes

    return pl.pallas_call(
        kern,
        out_shape=jax.ShapeDtypeStruct((B, Sq, D), q.dtype),
        grid_spec=pltpu.PrefetchScalarGridSpec(
            num_scalar_prefetch=0,
            grid=grid,
            in_specs=in_specs,
            out_specs=pl.BlockSpec((1, tq, D), lambda b, qi, ki: (b, qi, 0)),
            scratch_shapes=[
                pltpu.VMEM((h, tq, 1), jnp.float32),     # running max m
                pltpu.VMEM((h, tq, 1), jnp.float32),     # running denom l
                pltpu.VMEM((h, tq, d_k), jnp.float32),   # running accumulator
            ],
        ),
        compiler_params=pltpu.CompilerParams(
            dimension_semantics=("parallel", "parallel", "arbitrary"),
            vmem_limit_bytes=_vmem_limit(est)),
    )(*inputs)


# ----------------------------------------------------------------------------
# MultiHeadedAttention forward
# ----------------------------------------------------------------------------

def prepare_mha_params(params, compute_dtype=COMPUTE_DTYPE):
    """One-time parameter prep (do NOT call per forward step).
    params: list of 4 (W, b) with W shape (d_in, d_out) (transposed vs torch),
    order W_q, W_k, W_v, W_o.  Weights cast to the MXU compute dtype; fused QKV
    weight/bias built once here (hoisted out of the per-call path)."""
    (wq, bq), (wk, bk), (wv, bv), (wo, bo) = params
    f32 = jnp.float32
    return {
        "compute_dtype": compute_dtype,
        "w_qkv": jnp.concatenate([wq, wk, wv], axis=1).astype(compute_dtype),
        "b_qkv": jnp.concatenate([bq, bk, bv], axis=0).astype(f32),
        "wq": wq.astype(compute_dtype), "bq": bq.astype(f32),
        "wk": wk.astype(compute_dtype), "bk": bk.astype(f32),
        "wv": wv.astype(compute_dtype), "bv": bv.astype(f32),
        "wo": wo.astype(compute_dtype), "bo": bo.astype(f32),
    }


def multi_headed_attention(prepared, query, key, value, mask, h, *,
                           causal=False, self_attention=None):
    """query: (B, Sq, d_model); key/value: (B, Skv, d_model); mask: (B, Sq, Skv) or None.
    Heads are split/merged inside the attention kernel (no JAX-level transposes on
    activations).  `self_attention=True` takes the fused-QKV path (explicit flag,
    not fragile object-identity dispatch)."""
    B, Sq, d_model = query.shape
    Skv = key.shape[1]
    cdt = prepared["compute_dtype"]
    if self_attention is None:
        self_attention = (query is key) and (query is value)

    if self_attention:
        q2, k2, v2 = qkv_proj_pallas(query.reshape(B * Sq, d_model),
                                     prepared["w_qkv"], prepared["b_qkv"], out_dtype=cdt)
        Sk = Sq
    else:
        q2 = linear_pallas(query.reshape(B * Sq, d_model),
                           prepared["wq"], prepared["bq"], out_dtype=cdt)
        k2 = linear_pallas(key.reshape(B * Skv, d_model),
                           prepared["wk"], prepared["bk"], out_dtype=cdt)
        v2 = linear_pallas(value.reshape(B * Skv, d_model),
                           prepared["wv"], prepared["bv"], out_dtype=cdt)
        Sk = Skv

    q3 = q2.reshape(B, Sq, d_model)
    k3 = k2.reshape(B, Sk, d_model)
    v3 = v2.reshape(B, Sk, d_model)

    ctx = flash_mha_pallas(q3, k3, v3, mask, h, causal=causal)   # (B, Sq, d_model), bf16

    out = linear_pallas(ctx.reshape(B * Sq, d_model),
                        prepared["wo"], prepared["bo"], out_dtype=query.dtype)
    return out.reshape(B, Sq, d_model)


# ----------------------------------------------------------------------------
# Pure-JAX f32 reference (mirrors the PyTorch module, eval-mode dropout)
# ----------------------------------------------------------------------------

def reference(params, query, key, value, mask, h):
    B, S, d_model = query.shape
    d_k = d_model // h

    def lin(x, wb):
        w, b = wb
        return x @ w + b

    def split(y, s):
        return y.reshape(B, s, h, d_k).transpose(0, 2, 1, 3)     # (B, h, S, d_k)

    Sk = key.shape[1]
    q = split(lin(query, params[0]), S)
    k = split(lin(key, params[1]), Sk)
    v = split(lin(value, params[2]), Sk)
    scores = jnp.einsum("bhqd,bhkd->bhqk", q, k) / math.sqrt(d_k)
    if mask is not None:
        scores = jnp.where(mask[:, None, :, :] == 0, NEG_INF, scores)
    p = jax.nn.softmax(scores, axis=-1)
    x = jnp.einsum("bhqk,bhkd->bhqd", p, v)
    x = x.transpose(0, 2, 1, 3).reshape(B, S, d_model)
    return lin(x, params[3])


# ----------------------------------------------------------------------------
# Main
# ----------------------------------------------------------------------------

if __name__ == "__main__":
    B, S, d_model, h = 2, 8, 32, 4

    root = jax.random.PRNGKey(0)
    keys = jax.random.split(root, 12)

    # Deterministic parameter init: 4 linear layers (d_model -> d_model).
    params = []
    for i in range(4):
        w = jax.random.normal(keys[i], (d_model, d_model), jnp.float32) * 0.1
        b = jax.random.normal(keys[4 + i], (d_model,), jnp.float32) * 0.1
        params.append((w, b))

    x = jax.random.normal(keys[8], (B, S, d_model), jnp.float32)
    key_in = jax.random.normal(keys[9], (B, S, d_model), jnp.float32)
    value_in = jax.random.normal(keys[10], (B, S, d_model), jnp.float32)

    causal_mask = jnp.tril(jnp.ones((S, S), jnp.float32))[None].repeat(B, axis=0)
    rand_mask = (jax.random.uniform(keys[11], (B, S, S)) > 0.3).astype(jnp.float32)

    prepared = prepare_mha_params(params)   # one-time: bf16 weight cast + fused QKV

    # Tolerance covers bf16 MXU inputs (with f32 accumulation) plus the EUP
    # approx-reciprocal in the softmax normalization, vs an all-f32 reference.
    TOL = 3e-2

    # 1) Self-attention, in-kernel causal mask + masked-tile skipping.
    out1 = jax.block_until_ready(multi_headed_attention(
        prepared, x, x, x, None, h, causal=True, self_attention=True))
    ref1 = reference(params, x, x, x, causal_mask, h)
    assert out1.shape == (B, S, d_model)
    assert jnp.allclose(out1, ref1, atol=TOL, rtol=TOL), "causal self-attn mismatch"

    # 2) Self-attention with an explicit (non-causal) mask.
    out2 = jax.block_until_ready(multi_headed_attention(
        prepared, x, x, x, rand_mask, h, self_attention=True))
    ref2 = reference(params, x, x, x, rand_mask, h)
    assert jnp.allclose(out2, ref2, atol=TOL, rtol=TOL), "masked self-attn mismatch"

    # 3) Cross-attention (separate projections), no mask.
    out3 = jax.block_until_ready(multi_headed_attention(
        prepared, x, key_in, value_in, None, h, self_attention=False))
    ref3 = reference(params, x, key_in, value_in, None, h)
    assert out3.shape == (B, S, d_model)
    assert jnp.allclose(out3, ref3, atol=TOL, rtol=TOL), "cross-attn mismatch"

    print("KERNEL_OK")
</pallas_src>

<mosaic_0001>
module attributes {stable_mosaic.version = 11 : i64} {
  func.func @_qkv_proj_kernel(%arg0: i32, %arg1: memref<16x32xf32, #tpu.memory_space<vmem>>, %arg2: memref<32x96xbf16, #tpu.memory_space<vmem>>, %arg3: memref<1x96xf32, #tpu.memory_space<vmem>>, %arg4: memref<16x32xbf16, #tpu.memory_space<vmem>>, %arg5: memref<16x32xbf16, #tpu.memory_space<vmem>>, %arg6: memref<16x32xbf16, #tpu.memory_space<vmem>>) attributes {dimension_semantics = [#tpu.dimension_semantics<parallel>], iteration_bounds = array<i64: 1>, scalar_prefetch = 0 : i64, scratch_operands = 0 : i64, tpu.core_type = #tpu.core_type<tc>, window_params = [{transform_indices = @transform_0, window_bounds = array<i64: 16, 32>}, {pipeline_mode = #tpu.pipeline_mode<synchronous>, transform_indices = @transform_1, window_bounds = array<i64: 32, 96>}, {pipeline_mode = #tpu.pipeline_mode<synchronous>, transform_indices = @transform_2, window_bounds = array<i64: 1, 96>}, {transform_indices = @transform_3, window_bounds = array<i64: 16, 32>}, {transform_indices = @transform_4, window_bounds = array<i64: 16, 32>}, {transform_indices = @transform_5, window_bounds = array<i64: 16, 32>}]} {
    %c0 = arith.constant 0 : index
    %c0_0 = arith.constant 0 : index
    %0 = vector.load %arg1[%c0, %c0_0] : memref<16x32xf32, #tpu.memory_space<vmem>>, vector<16x32xf32>
    %1 = arith.truncf %0 : vector<16x32xf32> to vector<16x32xbf16>
    %c0_1 = arith.constant 0 : index
    %c0_2 = arith.constant 0 : index
    %2 = vector.load %arg2[%c0_1, %c0_2] : memref<32x96xbf16, #tpu.memory_space<vmem>>, vector<32x96xbf16>
    %cst = arith.constant dense<0.000000e+00> : vector<16x96xf32>
    %3 = tpu.matmul %1, %2, %cst {dimension_numbers = #tpu.dot_dimension_numbers<[1], [0], [0], [1], [0, 0, 1, 1], [], []>} : vector<16x32xbf16>, vector<32x96xbf16>, vector<16x96xf32> -> vector<16x96xf32>
    %c0_3 = arith.constant 0 : index
    %c0_4 = arith.constant 0 : index
    %4 = vector.load %arg3[%c0_3, %c0_4] : memref<1x96xf32, #tpu.memory_space<vmem>>, vector<1x96xf32>
    %5 = vector.broadcast %4 : vector<1x96xf32> to vector<16x96xf32>
    %6 = arith.addf %3, %5 : vector<16x96xf32>
    %7 = arith.truncf %6 : vector<16x96xf32> to vector<16x96xbf16>
    %8 = vector.extract_strided_slice %7 {offsets = [0, 0], sizes = [16, 32], strides = [1, 1]} : vector<16x96xbf16> to vector<16x32xbf16>
    %c0_5 = arith.constant 0 : index
    %c0_6 = arith.constant 0 : index
    %9 = vector.load %arg4[%c0_5, %c0_6] : memref<16x32xbf16, #tpu.memory_space<vmem>>, vector<16x32xbf16>
    tpu.vector_store %arg4[%c0_5, %c0_6], %8 {strides = array<i32>} : memref<16x32xbf16, #tpu.memory_space<vmem>>, vector<16x32xbf16>,
    %10 = vector.extract_strided_slice %7 {offsets = [0, 32], sizes = [16, 32], strides = [1, 1]} : vector<16x96xbf16> to vector<16x32xbf16>
    %c0_7 = arith.constant 0 : index
    %c0_8 = arith.constant 0 : index
    %11 = vector.load %arg5[%c0_7, %c0_8] : memref<16x32xbf16, #tpu.memory_space<vmem>>, vector<16x32xbf16>
    tpu.vector_store %arg5[%c0_7, %c0_8], %10 {strides = array<i32>} : memref<16x32xbf16, #tpu.memory_space<vmem>>, vector<16x32xbf16>,
    %12 = vector.extract_strided_slice %7 {offsets = [0, 64], sizes = [16, 32], strides = [1, 1]} : vector<16x96xbf16> to vector<16x32xbf16>
    %c0_9 = arith.constant 0 : index
    %c0_10 = arith.constant 0 : index
    %13 = vector.load %arg6[%c0_9, %c0_10] : memref<16x32xbf16, #tpu.memory_space<vmem>>, vector<16x32xbf16>
    tpu.vector_store %arg6[%c0_9, %c0_10], %12 {strides = array<i32>} : memref<16x32xbf16, #tpu.memory_space<vmem>>, vector<16x32xbf16>,
    return
  }
  func.func @transform_0(%arg0: i32) -> (i32, i32) {
    %c0_i32 = arith.constant 0 : i32
    %c0_i32_0 = arith.constant 0 : i32
    return %arg0, %c0_i32 : i32, i32
  }
  func.func @transform_1(%arg0: i32) -> (i32, i32) {
    %c0_i32 = arith.constant 0 : i32
    %c0_i32_0 = arith.constant 0 : i32
    %c0_i32_1 = arith.constant 0 : i32
    return %c0_i32, %c0_i32_0 : i32, i32
  }
  func.func @transform_2(%arg0: i32) -> (i32, i32) {
    %c0_i32 = arith.constant 0 : i32
    %c0_i32_0 = arith.constant 0 : i32
    %c0_i32_1 = arith.constant 0 : i32
    return %c0_i32, %c0_i32_0 : i32, i32
  }
  func.func @transform_3(%arg0: i32) -> (i32, i32) {
    %c0_i32 = arith.constant 0 : i32
    %c0_i32_0 = arith.constant 0 : i32
    return %arg0, %c0_i32 : i32, i32
  }
  func.func @transform_4(%arg0: i32) -> (i32, i32) {
    %c0_i32 = arith.constant 0 : i32
    %c0_i32_0 = arith.constant 0 : i32
    return %arg0, %c0_i32 : i32, i32
  }
  func.func @transform_5(%arg0: i32) -> (i32, i32) {
    %c0_i32 = arith.constant 0 : i32
    %c0_i32_0 = arith.constant 0 : i32
    return %arg0, %c0_i32 : i32, i32
  }
}

</mosaic_0001>

<bundles_post_ra>
// kernel: tpu_custom_call.1
= control target key start
LH: loop header
LB: loop body
LE: loop exit
PB: predicated region body
PF: predicated region fallthrough
CT: control target
= control target key end

     0   :  { %11 = vsyncpa [#allocation3], 0  ;;  %s478_s0 = inlined_call_operand.hbm [shape: f32[16,32], index: 0, kind: input, shape index: {}]   ;;  %s479_s1 = inlined_call_operand.hbm [shape: bf16[32,96], index: 1, kind: input, shape index: {}]   ;;  %s480_s2 = inlined_call_operand.vmem [shape: f32[1,96], index: 2, kind: input, shape index: {}]   ;;  %s481_s3 = inlined_call_operand.hbm [shape: bf16[16,32], index: 3, kind: output, shape index: {0}]   ;;  %s482_s4 = inlined_call_operand.hbm [shape: bf16[16,32], index: 4, kind: output, shape index: {1}]   ;;  %s483_s5 = inlined_call_operand.hbm [shape: bf16[16,32], index: 5, kind: output, shape index: {2}]  }
   0x1   :  { %12 = vsyncpa [#allocation6], 0 }
   0x2   :  { %13 = vsyncpa [#allocation4], 0 }
   0x3   :  { %14 = vsyncpa [#allocation9], 0  ;;  %s346_s18 = smov [#allocation2]   ;;  %s228_s22 = scalar_lea.hbm %s478_s0, 256 }
   0x4   :  { %s20_s19 = sshll.u32 %s346_s18, 4  ;;  %p229_p0 = scmp.ne.s32.totalorder %s478_s0, %s228_s22  ;;  %s21_s19 = int_to_ptr.vmem [resolvable:$true] %s20_s19 }
   0x5   :  { %p232_p1 = scmp.lt.u32.totalorder %s228_s22, %s478_s0 }
   0x7   :  { %p234_p2 = pnand %p232_p1, %p229_p0 }
   0x9   :  { %237 = shalt.err (!%p234_p2)
}
   0xa   :  { %s238_s27 = scalar_lea.vmem %s21_s19, 256  ;;  %p243_p4 = scmp.lt.s32.totalorder %s21_s19, %s21_s19 }
   0xb   :  { %p239_p3 = scmp.ne.s32.totalorder %s21_s19, %s238_s27  ;;  %p244_p5 = scmp.lt.s32.totalorder %s238_s27, %s238_s27 }
   0xd   :  { %p245_p6 = por %p244_p5, %p243_p4 }
   0xf   :  { %p246_p7 = pnand %p245_p6, %p239_p3 }
  0x11   :  { %249 = shalt.err (!%p246_p7)
}
  0x12   :  { %s347_s28 = smov 128   ;;  %s348_s29 = smov 8  }
  0x13   :  { %26 = dma.hbm_to_vmem [thread:$0]  %s478_s0, 256, %s21_s19, [#allocation3], %s347_s28, %s347_s28, %s348_s29  }
  0x14   :  { %s349_s7 = smov [#allocation5]   ;;  %s250_s11 = scalar_lea.hbm %s479_s1, 256 }
  0x15   :  { %s32_s8 = sshll.u32 %s349_s7, 4  ;;  %p251_p8 = scmp.ne.s32.totalorder %s479_s1, %s250_s11  ;;  %s33_s8 = int_to_ptr.vmem [resolvable:$true] %s32_s8 }
  0x16   :  { %p254_p9 = scmp.lt.u32.totalorder %s250_s11, %s479_s1 }
  0x18   :  { %p256_p10 = pnand %p254_p9, %p251_p8 }
  0x1a   :  { %259 = shalt.err (!%p256_p10)
}
  0x1b   :  { %s260_s16 = scalar_lea.vmem %s33_s8, 256  ;;  %p265_p12 = scmp.lt.s32.totalorder %s33_s8, %s33_s8 }
  0x1c   :  { %p261_p11 = scmp.ne.s32.totalorder %s33_s8, %s260_s16  ;;  %p266_p13 = scmp.lt.s32.totalorder %s260_s16, %s260_s16 }
  0x1e   :  { %p267_p0 = por %p266_p13, %p265_p12 }
  0x20   :  { %p268_p1 = pnand %p267_p0, %p261_p11 }
  0x22   :  { %271 = shalt.err (!%p268_p1)
}
  0x23   :  { %s350_s0 = smov 64   ;;  %s351_s17 = smov 4  }
  0x24   :  { %38 = dma.hbm_to_vmem [thread:$0]  %s479_s1, 256, %s33_s8, [#allocation6], %s350_s0, %s350_s0, %s351_s17  }
  0x25   :  { %338 = dma.done.wait [#allocation3], 256  }
  0x26   :  { %339 = vsyncadd [#allocation3], 4294967040 }
  0x27   :  { %340 = dma.done.wait [#allocation6], 256  }
  0x28   :  { %341 = vsyncadd [#allocation6], 4294967040  ;;  %v352_v0 = vmov 0.0   ;;  %vm353_vm0 = vmmov 0   ;;  %v226_v1 = vld [vmem:[#allocation5] sm:$0xff]   ;;  %v227_v2 = vld [vmem:[#allocation5 + $0x8] sm:$0xff]  }
  0x29   :  { %206 = vmatprep.subr.bf16.mxu0 %v352_v0  ;;  %210 = vmatprep.mubr.msk.bf16.mxu0 %vm353_vm0, %v352_v0  ;;  %v48_v3 = vld [vmem:[#allocation2] sm:$0xff]  ;;  %v49_v4 = vld [vmem:[#allocation2 + $0x8] sm:$0xff]  ;;  %vm74_vm1 = vcmask 261120   ;;  %vm127_vm2 = vcmask 257024   ;;  %s354_s21 = smov [#allocation7]   ;;  %s355_s23 = smov 96  }
  0x2a   :  { %207 = vmatpush3.bf16.msra.mxu0 %v226_v1  ;;  %v50_v5 = vpack.c.bf16 %v49_v4, %v48_v3  ;;  %v195_v6 = vld [vmem:[%s480_s2] ss:$0 sm:$0xff]  ;;  %s151_s22 = sshll.u32 %s354_s21, 4  ;;  %s152_s22 = int_to_ptr.vmem [resolvable:$true] %s151_s22 }
  0x2b   :  { %208 = vmatprep.subr.bf16.mxu0 %v352_v0  ;;  %s272_s2 = scalar_lea.vmem %s152_s22, 128  ;;  %p277_p3 = scmp.lt.s32.totalorder %s152_s22, %s152_s22 }
  0x2c   :  { %p273_p2 = scmp.ne.s32.totalorder %s152_s22, %s272_s2  ;;  %p278_p4 = scmp.lt.s32.totalorder %s272_s2, %s272_s2 }
  0x2e   :  { %209 = vmatpush3.bf16.msra.mxu0 %v227_v2  ;;  %p279_p5 = por %p278_p4, %p277_p3 }
  0x30   :  { %p280_p6 = pnand %p279_p5, %p273_p2 }
  0x31   :  { %211 = vmatmul.mubr.msk.bf16.vlgmr.msra.gmra.mrb[0].mxu0 %vm74_vm1, %v50_v5 }
 0x104   :  { %v112_v7 = vpop.f32.mrb[0].mxu0 }
 0x105   :  { %v113_v8 = vadd.f32 %v195_v6, %v112_v7  ;;  %v212_v9 = vpop.f32.mrb[1].mxu0 }
 0x106   :  { %v115_v10 = vpop.f32.mrb[2].mxu0 }
 0x107   :  { %v201_v11 = vpack.c.bf16 %v113_v8, %v113_v8  ;;  %v116_v12 = vadd.f32 %v195_v6, %v115_v10  ;;  %v213_v13 = vpop.f32.mrb[3].mxu0 }
 0x109   :  { %v202_v14 = vpack.c.bf16 %v116_v12, %v116_v12  ;;  %138 = vrot.lane.b32.xlu1 %v201_v11, %s350_s0  ;;  %130 = vrot.lane.b32.xlu0 %v201_v11, %s355_s23  ;;  %128 = vst.msk [vmem:[#allocation7] sm:$0xf] %vm127_vm2, %v201_v11 }
 0x10b   :  { %129 = vst.msk [vmem:[#allocation7 + $0x4] sm:$0xf] %vm127_vm2, %v202_v14 }
 0x10c   :  { %283 = shalt.err (!%p280_p6)
}
 0x10d   :  { %s284_s26 = scalar_lea.hbm %s481_s3, 128 }
 0x10e   :  { %p285_p7 = scmp.ne.s32.totalorder %s481_s3, %s284_s26  ;;  %p288_p8 = scmp.lt.u32.totalorder %s284_s26, %s481_s3 }
 0x110   :  { %p290_p9 = pnand %p288_p8, %p285_p7 }
 0x112   :  { %293 = shalt.err (!%p290_p9)
}
 0x113   :  { %157 = dma.vmem_to_hbm [thread:$0]  %s152_s22, 128, %s481_s3, [#allocation4], %s350_s0, %s350_s0, %s351_s17  }
 0x114   :  { %140 = vrot.lane.b32.xlu1 %v202_v14, %s350_s0  ;;  %132 = vrot.lane.b32.xlu0 %v202_v14, %s355_s23  ;;  %s356_s8 = smov [#allocation8]   ;;  %s357_s10 = smov [#allocation10]  }
 0x115   :  { %s163_s9 = sshll.u32 %s356_s8, 4  ;;  %s175_s11 = sshll.u32 %s357_s10, 4  ;;  %s164_s9 = int_to_ptr.vmem [resolvable:$true] %s163_s9  ;;  %s439_s11 = int_to_ptr.vmem [resolvable:$true] %s175_s11 }
 0x116   :  { %s294_s3 = scalar_lea.vmem %s164_s9, 128  ;;  %p299_p11 = scmp.lt.s32.totalorder %s164_s9, %s164_s9 }
 0x117   :  { %p295_p10 = scmp.ne.s32.totalorder %s164_s9, %s294_s3  ;;  %p300_p12 = scmp.lt.s32.totalorder %s294_s3, %s294_s3 }
 0x119   :  { %p301_p13 = por %p300_p12, %p299_p11 }
 0x11b   :  { %p302_p0 = pnand %p301_p13, %p295_p10 }
 0x17b   :  { %v139_v15 = vpop.permute.xlu1 %138  ;;  %v131_v16 = vpop.permute.xlu0 %130 }
 0x17c   :  { %144 = vst.msk [vmem:[#allocation10] sm:$0xf] %vm127_vm2, %v139_v15  ;;  %136 = vst.msk [vmem:[#allocation8] sm:$0xf] %vm127_vm2, %v131_v16 }
 0x186   :  { %v141_v17 = vpop.permute.xlu1 %140  ;;  %v133_v18 = vpop.permute.xlu0 %132 }
 0x187   :  { %145 = vst.msk [vmem:[#allocation10 + $0x4] sm:$0xf] %vm127_vm2, %v141_v17  ;;  %137 = vst.msk [vmem:[#allocation8 + $0x4] sm:$0xf] %vm127_vm2, %v133_v18 }
 0x188   :  { %305 = shalt.err (!%p302_p0)
}
 0x189   :  { %s306_s14 = scalar_lea.hbm %s482_s4, 128 }
 0x18a   :  { %p307_p1 = scmp.ne.s32.totalorder %s482_s4, %s306_s14  ;;  %p310_p2 = scmp.lt.u32.totalorder %s306_s14, %s482_s4 }
 0x18c   :  { %p312_p3 = pnand %p310_p2, %p307_p1 }
 0x18e   :  { %315 = shalt.err (!%p312_p3)
}
 0x18f   :  { %169 = dma.vmem_to_hbm [thread:$0]  %s164_s9, 128, %s482_s4, [#allocation9], %s350_s0, %s350_s0, %s351_s17  }
 0x190   :  { %s316_s21 = scalar_lea.vmem %s439_s11, 128  ;;  %p321_p5 = scmp.lt.s32.totalorder %s439_s11, %s439_s11 }
 0x191   :  { %p317_p4 = scmp.ne.s32.totalorder %s439_s11, %s316_s21  ;;  %p322_p6 = scmp.lt.s32.totalorder %s316_s21, %s316_s21 }
 0x193   :  { %p323_p7 = por %p322_p6, %p321_p5 }
 0x195   :  { %p324_p8 = pnand %p323_p7, %p317_p4 }
 0x197   :  { %327 = shalt.err (!%p324_p8)
}
 0x198   :  { %s328_s2 = scalar_lea.hbm %s483_s5, 128 }
 0x199   :  { %p329_p9 = scmp.ne.s32.totalorder %s483_s5, %s328_s2  ;;  %p332_p10 = scmp.lt.u32.totalorder %s328_s2, %s483_s5 }
 0x19b   :  { %p334_p11 = pnand %p332_p10, %p329_p9 }
 0x19d   :  { %337 = shalt.err (!%p334_p11)
}
 0x19e   :  { %181 = dma.vmem_to_hbm [thread:$0]  %s439_s11, 128, %s483_s5, [#allocation9], %s350_s0, %s350_s0, %s351_s17  }
 0x19f   :  { %342 = dma.done.wait [#allocation4], 128  }
 0x1a0   :  { %343 = vsyncadd [#allocation4], 4294967168 }
 0x1a1   :  { %344 = dma.done.wait [#allocation9], 256  }
 0x1a2   :  { %345 = vsyncadd [#allocation9], 4294967040 }
 0x1a3   :  { %191 = vsyncpa [#allocation3], 1 }
 0x1a4   :  { %192 = vsyncpa [#allocation6], 1 }
 0x1a5   :  { %193 = vsyncpa [#allocation4], 1 }
 0x1a6   :  { %194 = vsyncpa [#allocation9], 1 }

</bundles_post_ra>
